<compile_context>
chip_gen: v7x
topology: tpu7x:2x2x1
jax: 0.10.0
libtpu: 0.0.40
codegen_flags: <defaults>
</compile_context>

<pallas_src>
import functools

import jax
import jax.numpy as jnp
from jax.experimental import pallas as pl
from jax.experimental.pallas import tpu as pltpu


def _round_up(a, m):
    return (a + m - 1) // m * m


def _encoder_lstm_kernel(x_ref, w_ref, b_ref, gamma_ref, beta_ref,
                         ow_ref, ob_ref, o_ref, *, h_true, h_pad):
    # x arrives as f32 from HBM; cast to bf16 on the VPU (free slot) right
    # before the MXU dot instead of paying a separate host-side HBM cast pass.
    x = x_ref[...].astype(jnp.bfloat16)                           # (TB, Din)

    # Single fused matmul for the three live gates (i, g, o): one MXU weight
    # push, one pass of x through the systolic array.  bf16 operands, f32 acc.
    z = jnp.dot(x, w_ref[...], preferred_element_type=jnp.float32) + b_ref[...]

    # Static, 128-aligned lane slices (h_pad is a multiple of 128).
    i_g = jax.nn.sigmoid(z[:, 0 * h_pad:1 * h_pad])
    g_g = jnp.tanh(z[:, 1 * h_pad:2 * h_pad])
    o_g = jax.nn.sigmoid(z[:, 2 * h_pad:3 * h_pad])
    c1 = i_g * g_g                                                # (+ f_g*c0, c0 = 0)
    h1 = o_g * jnp.tanh(c1)                                       # (TB, H_pad) f32
    # Padded lanes of h1 are exactly 0: zero weight cols + zero bias give
    # z = 0 there, so h1 = sigmoid(0) * tanh(sigmoid(0) * tanh(0)) = 0.

    # LayerNorm over the TRUE hidden width (padded lanes contribute 0 to both
    # sums).  Single-pass statistics are safe here: h1 is bounded in (-1, 1).
    inv_h = 1.0 / float(h_true)
    s = jnp.sum(h1, axis=-1, keepdims=True)
    sq = jnp.sum(h1 * h1, axis=-1, keepdims=True)
    mean = s * inv_h
    var = sq * inv_h - mean * mean
    normed = (h1 - mean) * jax.lax.rsqrt(var + 1e-5)
    normed = normed * gamma_ref[...] + beta_ref[...]              # padded lanes -> 0

    # out: Linear(H -> Din), bf16 operands, f32 accumulation.  Zero-padded rows
    # of out_w / lanes of normed contribute nothing; padded output cols are 0.
    out = jnp.dot(normed.astype(ow_ref.dtype), ow_ref[...],
                  preferred_element_type=jnp.float32) + ob_ref[...]

    # Dropout: identity in eval/inference mode.
    # TODO(synk): training-mode dropout (random mask via pltpu.prng_random_bits).
    o_ref[...] = out.astype(o_ref.dtype)                          # lane-dense store


def _resident_spec(shape):
    """Constant-index (VMEM-resident) block; single-buffered to save VMEM."""
    index_map = lambda b: (0, 0)
    try:
        return pl.BlockSpec(shape, index_map, pipeline_mode=pl.Buffered(1))
    except (TypeError, AttributeError):
        # Older Pallas without pipeline_mode support: fall back to defaults.
        return pl.BlockSpec(shape, index_map)


def _pick_batch_tile(B, block_b):
    TB = min(block_b, _round_up(B, 16))
    TB = _round_up(TB, 16)                    # bf16 sublane packing of the x tile
    # v7x has 2 TensorCores; with dimension_semantics=("parallel",) the batch
    # grid shards across them, so prefer >= 2 grid blocks when B allows it.
    if _round_up(B, TB) // TB < 2 and TB >= 32:
        TB = _round_up(TB // 2, 16)
    return TB


def _vmem_limit_bytes(TB, Din, Din_pad, H_pad):
    f32, bf16 = 4, 2
    tiles = 2 * TB * Din * f32 + 2 * TB * Din_pad * f32           # x / out, double-buffered
    weights = (Din * 3 * H_pad * bf16 + 3 * H_pad * f32           # W_igo / b_igo (1 buf)
               + 2 * H_pad * f32                                  # gamma / beta
               + H_pad * Din_pad * bf16 + Din_pad * f32)          # out_w / out_b
    temps = TB * 3 * H_pad * f32 + 8 * TB * H_pad * f32           # z + gate/LN temporaries
    needed = tiles + weights + temps
    # ~2x headroom for compiler scratch; floor 16 MiB (safe on every chip),
    # cap 48 MiB (stays inside v7x's 64 MiB physical VMEM with headroom).
    return int(min(max(2 * needed, 16 << 20), 48 << 20))


def encoder_lstm_forward(x, fused_params, model_dim, *, block_b=512):
    """x: (B, Din) float32.  Returns (B, 1, Din) float32 (eval-mode forward)."""
    B, Din = x.shape
    w_igo, b_igo, gamma, beta, out_w, out_b = fused_params
    H_pad = gamma.shape[1]
    Din_pad = out_b.shape[1]

    TB = _pick_batch_tile(B, block_b)
    Bp = _round_up(B, TB)
    xp = x if Bp == B else jnp.pad(x, ((0, Bp - B), (0, 0)))      # f32, no host cast

    grid = (Bp // TB,)
    kernel = functools.partial(_encoder_lstm_kernel, h_true=model_dim, h_pad=H_pad)

    y = pl.pallas_call(
        kernel,
        out_shape=jax.ShapeDtypeStruct((Bp, Din_pad), jnp.float32),
        grid=grid,
        in_specs=[
            pl.BlockSpec((TB, Din), lambda b: (b, 0)),   # x tile (f32), pipelined
            _resident_spec((Din, 3 * H_pad)),            # fused gate weights (bf16)
            _resident_spec((1, 3 * H_pad)),              # fused gate biases  (f32)
            _resident_spec((1, H_pad)),                  # layernorm gamma (f32)
            _resident_spec((1, H_pad)),                  # layernorm beta  (f32)
            _resident_spec((H_pad, Din_pad)),            # out weight (bf16)
            _resident_spec((1, Din_pad)),                # out bias   (f32)
        ],
        out_specs=pl.BlockSpec((TB, Din_pad), lambda b: (b, 0)),
        compiler_params=pltpu.CompilerParams(
            dimension_semantics=("parallel",),
            vmem_limit_bytes=_vmem_limit_bytes(TB, Din, Din_pad, H_pad)),
    )(xp, w_igo, b_igo, gamma, beta, out_w, out_b)

    return y[:B, :Din].reshape(B, 1, Din)


def init_raw_params(key, input_dim, model_dim):
    """PyTorch-shaped params (weights already transposed to [in, out])."""
    ks = jax.random.split(key, 7)
    u = lambda k, shape, s: jax.random.uniform(k, shape, jnp.float32, -s, s)

    fc_s = 1.0 / float(input_dim) ** 0.5
    fc_w = u(ks[0], (input_dim, input_dim), fc_s)
    fc_b = u(ks[1], (1, input_dim), fc_s)

    l_s = 1.0 / float(model_dim) ** 0.5
    w_ih = u(ks[2], (input_dim, 4 * model_dim), l_s)   # gate order: i, f, g, o
    b_ih = u(ks[3], (1, 4 * model_dim), l_s)
    b_hh = u(ks[4], (1, 4 * model_dim), l_s)
    # W_hh is irrelevant for a single step with h0 = 0.

    gamma = jnp.ones((1, model_dim), jnp.float32)
    beta = jnp.zeros((1, model_dim), jnp.float32)

    out_w = u(ks[5], (model_dim, input_dim), l_s)
    out_b = u(ks[6], (1, input_dim), l_s)

    return (fc_w, fc_b, w_ih, b_ih, b_hh, gamma, beta, out_w, out_b)


def fuse_params(raw, input_dim, model_dim):
    """Fold fc into the LSTM input projection, drop the dead forget gate,
    concatenate the live gates into one lane-dense weight, zero-pad H and Din
    to multiples of 128, and cast matmul weights to bf16 (biases/LN stay f32)."""
    fc_w, fc_b, w_ih, b_ih, b_hh, gamma, beta, out_w, out_b = raw
    H, Din = model_dim, input_dim
    H_pad = _round_up(H, 128)
    Din_pad = _round_up(Din, 128)
    b_lstm = b_ih + b_hh

    def gate(k):
        w = w_ih[:, k * H:(k + 1) * H]                           # (Din, H)
        w_f = fc_w @ w                                           # fc folded in
        b_f = fc_b @ w + b_lstm[:, k * H:(k + 1) * H]
        w_f = jnp.pad(w_f, ((0, 0), (0, H_pad - H)))             # zero pad cols
        b_f = jnp.pad(b_f, ((0, 0), (0, H_pad - H)))
        return w_f, b_f

    wi, bi = gate(0)   # input gate
    wg, bg = gate(2)   # cell candidate
    wo, bo = gate(3)   # output gate
    w_igo = jnp.concatenate([wi, wg, wo], axis=1).astype(jnp.bfloat16)  # (Din, 3*H_pad)
    b_igo = jnp.concatenate([bi, bg, bo], axis=1)                       # (1, 3*H_pad) f32

    gamma_p = jnp.pad(gamma, ((0, 0), (0, H_pad - H)))           # pads must stay zero
    beta_p = jnp.pad(beta, ((0, 0), (0, H_pad - H)))
    ow = jnp.pad(out_w, ((0, H_pad - H), (0, Din_pad - Din))).astype(jnp.bfloat16)
    ob = jnp.pad(out_b, ((0, 0), (0, Din_pad - Din)))

    return (w_igo, b_igo, gamma_p, beta_p, ow, ob)


def encoder_lstm_reference(x, raw, model_dim):
    """Pure-JAX f32 reference of the PyTorch forward (eval mode)."""
    fc_w, fc_b, w_ih, b_ih, b_hh, gamma, beta, out_w, out_b = raw
    H = model_dim
    h = x @ fc_w + fc_b
    gates = h @ w_ih + b_ih + b_hh
    i = jax.nn.sigmoid(gates[:, 0 * H:1 * H])
    g = jnp.tanh(gates[:, 2 * H:3 * H])
    o = jax.nn.sigmoid(gates[:, 3 * H:4 * H])
    c1 = i * g                                    # f gate multiplies c0 = 0
    h1 = o * jnp.tanh(c1)
    mean = h1.mean(-1, keepdims=True)
    var = ((h1 - mean) ** 2).mean(-1, keepdims=True)
    n = (h1 - mean) * jax.lax.rsqrt(var + 1e-5) * gamma + beta
    out = n @ out_w + out_b
    return out.reshape(x.shape[0], 1, -1)


if __name__ == "__main__":
    B, INPUT_DIM, MODEL_DIM = 2, 16, 32
    key = jax.random.PRNGKey(0)
    k_x, k_p = jax.random.split(key)

    x = jax.random.normal(k_x, (B, INPUT_DIM), jnp.float32)
    raw = init_raw_params(k_p, INPUT_DIM, MODEL_DIM)
    fused = fuse_params(raw, INPUT_DIM, MODEL_DIM)

    out = encoder_lstm_forward(x, fused, MODEL_DIM)
    out = jax.block_until_ready(out)
    assert out.shape == (B, 1, INPUT_DIM), out.shape

    # Loose tolerance: bf16 matmul operands (and the bf16 fc-folded weights)
    # introduce ~1e-2 level differences, amplified by LayerNorm, vs. the
    # all-f32 unfused reference.  Intentional inference-precision tradeoff.
    ref = encoder_lstm_reference(x, raw, MODEL_DIM)
    err = float(jnp.max(jnp.abs(out - ref)))
    assert err < 0.15, f"max abs err vs reference: {err}"

    print("KERNEL_OK")
</pallas_src>

<mosaic_0001>
module attributes {stable_mosaic.version = 11 : i64} {
  func.func @_encoder_lstm_kernel(%arg0: i32, %arg1: memref<16x16xf32, #tpu.memory_space<vmem>>, %arg2: memref<16x384xbf16, #tpu.memory_space<vmem>>, %arg3: memref<1x384xf32, #tpu.memory_space<vmem>>, %arg4: memref<1x128xf32, #tpu.memory_space<vmem>>, %arg5: memref<1x128xf32, #tpu.memory_space<vmem>>, %arg6: memref<128x128xbf16, #tpu.memory_space<vmem>>, %arg7: memref<1x128xf32, #tpu.memory_space<vmem>>, %arg8: memref<16x128xf32, #tpu.memory_space<vmem>>) attributes {dimension_semantics = [#tpu.dimension_semantics<parallel>], iteration_bounds = array<i64: 1>, scalar_prefetch = 0 : i64, scratch_operands = 0 : i64, tpu.core_type = #tpu.core_type<tc>, window_params = [{transform_indices = @transform_0, window_bounds = array<i64: 16, 16>}, {pipeline_mode = #tpu.pipeline_mode<synchronous>, transform_indices = @transform_1, window_bounds = array<i64: 16, 384>}, {pipeline_mode = #tpu.pipeline_mode<synchronous>, transform_indices = @transform_2, window_bounds = array<i64: 1, 384>}, {pipeline_mode = #tpu.pipeline_mode<synchronous>, transform_indices = @transform_3, window_bounds = array<i64: 1, 128>}, {pipeline_mode = #tpu.pipeline_mode<synchronous>, transform_indices = @transform_4, window_bounds = array<i64: 1, 128>}, {pipeline_mode = #tpu.pipeline_mode<synchronous>, transform_indices = @transform_5, window_bounds = array<i64: 128, 128>}, {pipeline_mode = #tpu.pipeline_mode<synchronous>, transform_indices = @transform_6, window_bounds = array<i64: 1, 128>}, {transform_indices = @transform_7, window_bounds = array<i64: 16, 128>}]} {
    %c0 = arith.constant 0 : index
    %c0_0 = arith.constant 0 : index
    %0 = vector.load %arg1[%c0, %c0_0] : memref<16x16xf32, #tpu.memory_space<vmem>>, vector<16x16xf32>
    %1 = arith.truncf %0 : vector<16x16xf32> to vector<16x16xbf16>
    %c0_1 = arith.constant 0 : index
    %c0_2 = arith.constant 0 : index
    %2 = vector.load %arg2[%c0_1, %c0_2] : memref<16x384xbf16, #tpu.memory_space<vmem>>, vector<16x384xbf16>
    %cst = arith.constant dense<0.000000e+00> : vector<16x384xf32>
    %3 = tpu.matmul %1, %2, %cst {dimension_numbers = #tpu.dot_dimension_numbers<[1], [0], [0], [1], [0, 0, 1, 1], [], []>} : vector<16x16xbf16>, vector<16x384xbf16>, vector<16x384xf32> -> vector<16x384xf32>
    %c0_3 = arith.constant 0 : index
    %c0_4 = arith.constant 0 : index
    %4 = vector.load %arg3[%c0_3, %c0_4] : memref<1x384xf32, #tpu.memory_space<vmem>>, vector<1x384xf32>
    %5 = vector.broadcast %4 : vector<1x384xf32> to vector<16x384xf32>
    %6 = arith.addf %3, %5 : vector<16x384xf32>
    %7 = vector.extract_strided_slice %6 {offsets = [0, 0], sizes = [16, 128], strides = [1, 1]} : vector<16x384xf32> to vector<16x128xf32>
    %8 = arith.negf %7 : vector<16x128xf32>
    %9 = math.exp %8 : vector<16x128xf32>
    %cst_5 = arith.constant 1.000000e+00 : f32
    %10 = vector.broadcast %cst_5 : f32 to vector<16x128xf32>
    %11 = arith.addf %10, %9 : vector<16x128xf32>
    %12 = arith.divf %10, %11 : vector<16x128xf32>
    %13 = vector.extract_strided_slice %6 {offsets = [0, 128], sizes = [16, 128], strides = [1, 1]} : vector<16x384xf32> to vector<16x128xf32>
    %14 = math.tanh %13 : vector<16x128xf32>
    %15 = vector.extract_strided_slice %6 {offsets = [0, 256], sizes = [16, 128], strides = [1, 1]} : vector<16x384xf32> to vector<16x128xf32>
    %16 = arith.negf %15 : vector<16x128xf32>
    %17 = math.exp %16 : vector<16x128xf32>
    %cst_6 = arith.constant 1.000000e+00 : f32
    %18 = vector.broadcast %cst_6 : f32 to vector<16x128xf32>
    %19 = arith.addf %18, %17 : vector<16x128xf32>
    %20 = arith.divf %18, %19 : vector<16x128xf32>
    %21 = arith.mulf %12, %14 : vector<16x128xf32>
    %22 = math.tanh %21 : vector<16x128xf32>
    %23 = arith.mulf %20, %22 : vector<16x128xf32>
    %cst_7 = arith.constant dense<0.000000e+00> : vector<16xf32>
    %24 = vector.multi_reduction <add>, %23, %cst_7 [1] : vector<16x128xf32> to vector<16xf32>
    %25 = vector.shape_cast %24 : vector<16xf32> to vector<16x1xf32>
    %26 = arith.mulf %23, %23 : vector<16x128xf32>
    %cst_8 = arith.constant dense<0.000000e+00> : vector<16xf32>
    %27 = vector.multi_reduction <add>, %26, %cst_8 [1] : vector<16x128xf32> to vector<16xf32>
    %28 = vector.shape_cast %27 : vector<16xf32> to vector<16x1xf32>
    %cst_9 = arith.constant 3.125000e-02 : f32
    %29 = vector.broadcast %cst_9 : f32 to vector<16x1xf32>
    %30 = arith.mulf %25, %29 : vector<16x1xf32>
    %cst_10 = arith.constant 3.125000e-02 : f32
    %31 = vector.broadcast %cst_10 : f32 to vector<16x1xf32>
    %32 = arith.mulf %28, %31 : vector<16x1xf32>
    %33 = arith.mulf %30, %30 : vector<16x1xf32>
    %34 = arith.subf %32, %33 : vector<16x1xf32>
    %35 = vector.broadcast %30 : vector<16x1xf32> to vector<16x128xf32>
    %36 = arith.subf %23, %35 : vector<16x128xf32>
    %cst_11 = arith.constant 9.99999974E-6 : f32
    %37 = vector.broadcast %cst_11 : f32 to vector<16x1xf32>
    %38 = arith.addf %34, %37 : vector<16x1xf32>
    %39 = math.rsqrt %38 : vector<16x1xf32>
    %40 = vector.broadcast %39 : vector<16x1xf32> to vector<16x128xf32>
    %41 = arith.mulf %36, %40 : vector<16x128xf32>
    %c0_12 = arith.constant 0 : index
    %c0_13 = arith.constant 0 : index
    %42 = vector.load %arg4[%c0_12, %c0_13] : memref<1x128xf32, #tpu.memory_space<vmem>>, vector<1x128xf32>
    %43 = vector.broadcast %42 : vector<1x128xf32> to vector<16x128xf32>
    %44 = arith.mulf %41, %43 : vector<16x128xf32>
    %c0_14 = arith.constant 0 : index
    %c0_15 = arith.constant 0 : index
    %45 = vector.load %arg5[%c0_14, %c0_15] : memref<1x128xf32, #tpu.memory_space<vmem>>, vector<1x128xf32>
    %46 = vector.broadcast %45 : vector<1x128xf32> to vector<16x128xf32>
    %47 = arith.addf %44, %46 : vector<16x128xf32>
    %48 = arith.truncf %47 : vector<16x128xf32> to vector<16x128xbf16>
    %c0_16 = arith.constant 0 : index
    %c0_17 = arith.constant 0 : index
    %49 = vector.load %arg6[%c0_16, %c0_17] : memref<128x128xbf16, #tpu.memory_space<vmem>>, vector<128x128xbf16>
    %cst_18 = arith.constant dense<0.000000e+00> : vector<16x128xf32>
    %50 = tpu.matmul %48, %49, %cst_18 {dimension_numbers = #tpu.dot_dimension_numbers<[1], [0], [0], [1], [0, 0, 1, 1], [], []>} : vector<16x128xbf16>, vector<128x128xbf16>, vector<16x128xf32> -> vector<16x128xf32>
    %c0_19 = arith.constant 0 : index
    %c0_20 = arith.constant 0 : index
    %51 = vector.load %arg7[%c0_19, %c0_20] : memref<1x128xf32, #tpu.memory_space<vmem>>, vector<1x128xf32>
    %52 = vector.broadcast %51 : vector<1x128xf32> to vector<16x128xf32>
    %53 = arith.addf %50, %52 : vector<16x128xf32>
    %c0_21 = arith.constant 0 : index
    %c0_22 = arith.constant 0 : index
    %54 = vector.load %arg8[%c0_21, %c0_22] : memref<16x128xf32, #tpu.memory_space<vmem>>, vector<16x128xf32>
    tpu.vector_store %arg8[%c0_21, %c0_22], %53 {strides = array<i32>} : memref<16x128xf32, #tpu.memory_space<vmem>>, vector<16x128xf32>,
    return
  }
  func.func @transform_0(%arg0: i32) -> (i32, i32) {
    %c0_i32 = arith.constant 0 : i32
    %c0_i32_0 = arith.constant 0 : i32
    return %arg0, %c0_i32 : i32, i32
  }
  func.func @transform_1(%arg0: i32) -> (i32, i32) {
    %c0_i32 = arith.constant 0 : i32
    %c0_i32_0 = arith.constant 0 : i32
    %c0_i32_1 = arith.constant 0 : i32
    return %c0_i32, %c0_i32_0 : i32, i32
  }
  func.func @transform_2(%arg0: i32) -> (i32, i32) {
    %c0_i32 = arith.constant 0 : i32
    %c0_i32_0 = arith.constant 0 : i32
    %c0_i32_1 = arith.constant 0 : i32
    return %c0_i32, %c0_i32_0 : i32, i32
  }
  func.func @transform_3(%arg0: i32) -> (i32, i32) {
    %c0_i32 = arith.constant 0 : i32
    %c0_i32_0 = arith.constant 0 : i32
    %c0_i32_1 = arith.constant 0 : i32
    return %c0_i32, %c0_i32_0 : i32, i32
  }
  func.func @transform_4(%arg0: i32) -> (i32, i32) {
    %c0_i32 = arith.constant 0 : i32
    %c0_i32_0 = arith.constant 0 : i32
    %c0_i32_1 = arith.constant 0 : i32
    return %c0_i32, %c0_i32_0 : i32, i32
  }
  func.func @transform_5(%arg0: i32) -> (i32, i32) {
    %c0_i32 = arith.constant 0 : i32
    %c0_i32_0 = arith.constant 0 : i32
    %c0_i32_1 = arith.constant 0 : i32
    return %c0_i32, %c0_i32_0 : i32, i32
  }
  func.func @transform_6(%arg0: i32) -> (i32, i32) {
    %c0_i32 = arith.constant 0 : i32
    %c0_i32_0 = arith.constant 0 : i32
    %c0_i32_1 = arith.constant 0 : i32
    return %c0_i32, %c0_i32_0 : i32, i32
  }
  func.func @transform_7(%arg0: i32) -> (i32, i32) {
    %c0_i32 = arith.constant 0 : i32
    %c0_i32_0 = arith.constant 0 : i32
    return %arg0, %c0_i32 : i32, i32
  }
}

</mosaic_0001>

<bundles_post_ra>
// kernel: tpu_custom_call.1
= control target key start
LH: loop header
LB: loop body
LE: loop exit
PB: predicated region body
PF: predicated region fallthrough
CT: control target
= control target key end

     0   :  { %12 = vsyncpa [#allocation3], 0  ;;  %s740_s0 = inlined_call_operand.hbm [shape: f32[16,16], index: 0, kind: input, shape index: {}]   ;;  %s741_s1 = inlined_call_operand.hbm [shape: bf16[16,384], index: 1, kind: input, shape index: {}]   ;;  %s742_s2 = inlined_call_operand.vmem [shape: f32[1,384], index: 2, kind: input, shape index: {}]   ;;  %s743_s3 = inlined_call_operand.vmem [shape: f32[1,128], index: 3, kind: input, shape index: {}]   ;;  %s744_s4 = inlined_call_operand.vmem [shape: f32[1,128], index: 4, kind: input, shape index: {}]   ;;  %s745_s5 = inlined_call_operand.hbm [shape: bf16[128,128], index: 5, kind: input, shape index: {}]   ;;  %s746_s6 = inlined_call_operand.vmem [shape: f32[1,128], index: 6, kind: input, shape index: {}]   ;;  %s747_s7 = inlined_call_operand.hbm [shape: f32[16,128], index: 7, kind: output, shape index: {}]  }
   0x1   :  { %13 = vsyncpa [#allocation6], 0 }
   0x2   :  { %14 = vsyncpa [#allocation4], 0  ;;  %s610_s24 = smov [#allocation5]   ;;  %s516_s28 = scalar_lea.hbm %s741_s1, 384 }
   0x3   :  { %s32_s25 = sshll.u32 %s610_s24, 4  ;;  %p517_p0 = scmp.ne.s32.totalorder %s741_s1, %s516_s28  ;;  %s33_s25 = int_to_ptr.vmem [resolvable:$true] %s32_s25 }
   0x4   :  { %p520_p1 = scmp.lt.u32.totalorder %s516_s28, %s741_s1 }
   0x6   :  { %p522_p2 = pnand %p520_p1, %p517_p0 }
   0x8   :  { %525 = shalt.err (!%p522_p2)
}
   0x9   :  { %s526_s10 = scalar_lea.vmem %s33_s25, 384  ;;  %p531_p4 = scmp.lt.s32.totalorder %s33_s25, %s33_s25 }
   0xa   :  { %p527_p3 = scmp.ne.s32.totalorder %s33_s25, %s526_s10  ;;  %p532_p5 = scmp.lt.s32.totalorder %s526_s10, %s526_s10 }
   0xc   :  { %p533_p6 = por %p532_p5, %p531_p4 }
   0xe   :  { %p534_p7 = pnand %p533_p6, %p527_p3 }
  0x10   :  { %537 = shalt.err (!%p534_p7)
}
  0x11   :  { %s611_s11 = smov 192   ;;  %s612_s12 = smov 12  }
  0x12   :  { %38 = dma.hbm_to_vmem [thread:$0]  %s741_s1, 384, %s33_s25, [#allocation6], %s611_s11, %s611_s11, %s612_s12  }
  0x13   :  { %s613_s15 = smov [#allocation2]   ;;  %s538_s19 = scalar_lea.hbm %s740_s0, 256 }
  0x14   :  { %s20_s16 = sshll.u32 %s613_s15, 4  ;;  %p539_p8 = scmp.ne.s32.totalorder %s740_s0, %s538_s19  ;;  %s21_s16 = int_to_ptr.vmem [resolvable:$true] %s20_s16 }
  0x15   :  { %p542_p9 = scmp.lt.u32.totalorder %s538_s19, %s740_s0 }
  0x17   :  { %p544_p10 = pnand %p542_p9, %p539_p8 }
  0x19   :  { %547 = shalt.err (!%p544_p10)
}
  0x1a   :  { %s548_s24 = scalar_lea.vmem %s21_s16, 256  ;;  %p553_p12 = scmp.lt.s32.totalorder %s21_s16, %s21_s16 }
  0x1b   :  { %p549_p11 = scmp.ne.s32.totalorder %s21_s16, %s548_s24  ;;  %p554_p13 = scmp.lt.s32.totalorder %s548_s24, %s548_s24 }
  0x1d   :  { %p555_p0 = por %p554_p13, %p553_p12 }
  0x1f   :  { %p556_p1 = pnand %p555_p0, %p549_p11 }
  0x21   :  { %559 = shalt.err (!%p556_p1)
}
  0x22   :  { %s614_s1 = smov 128   ;;  %s615_s25 = smov 8  }
  0x23   :  { %26 = dma.hbm_to_vmem [thread:$0]  %s740_s0, 256, %s21_s16, [#allocation3], %s614_s1, %s614_s1, %s615_s25  }
  0x24   :  { %s616_s28 = smov [#allocation7]   ;;  %s560_s9 = scalar_lea.hbm %s745_s5, 1024 }
  0x25   :  { %s50_s29 = sshll.u32 %s616_s28, 4  ;;  %p561_p2 = scmp.ne.s32.totalorder %s745_s5, %s560_s9  ;;  %s51_s29 = int_to_ptr.vmem [resolvable:$true] %s50_s29 }
  0x26   :  { %p564_p3 = scmp.lt.u32.totalorder %s560_s9, %s745_s5 }
  0x28   :  { %p566_p4 = pnand %p564_p3, %p561_p2 }
  0x2a   :  { %569 = shalt.err (!%p566_p4)
}
  0x2b   :  { %s570_s14 = scalar_lea.vmem %s51_s29, 1024  ;;  %p575_p6 = scmp.lt.s32.totalorder %s51_s29, %s51_s29 }
  0x2c   :  { %p571_p5 = scmp.ne.s32.totalorder %s51_s29, %s570_s14  ;;  %p576_p7 = scmp.lt.s32.totalorder %s570_s14, %s570_s14 }
  0x2e   :  { %p577_p8 = por %p576_p7, %p575_p6 }
  0x30   :  { %p578_p9 = pnand %p577_p8, %p571_p5 }
  0x32   :  { %581 = shalt.err (!%p578_p9)
}
  0x33   :  { %s617_s0 = smov 64   ;;  %s618_s15 = smov 4  }
  0x34   :  { %56 = dma.hbm_to_vmem [thread:$0]  %s745_s5, 1024, %s51_s29, [#allocation6], %s617_s0, %s617_s0, %s618_s15  }
  0x35   :  { %604 = dma.done.wait [#allocation3], 256  }
  0x36   :  { %605 = vsyncadd [#allocation3], 4294967040 }
  0x37   :  { %606 = dma.done.wait [#allocation6], 1408  }
  0x38   :  { %607 = vsyncadd [#allocation6], 4294965888  ;;  %v619_v0 = vmov 0   ;;  %v620_v1 = vmov 0.0   ;;  %vm621_vm0 = vmmov 0   ;;  %v69_v4 = vld [vmem:[#allocation2] sm:$0xff]  ;;  %v78_v8 = vlaneseq }
  0x39   :  { %145 = vmatprep.mubr.bf16.mxu1 %v619_v0  ;;  %443 = vmatprep.subr.bf16.mxu0 %v620_v1  ;;  %v476_v2 = vld [vmem:[#allocation5 + $0x4] ss:$12 sps:$4 sm:$0xff]   ;;  %v478_v3 = vld [vmem:[#allocation5] ss:$12 sps:$4 sm:$0xff]   ;;  %v70_v5 = vld [vmem:[#allocation2 + $0x8] sm:$0xff]  ;;  %vm109_vm1 = vcmask 130048  }
  0x3a   :  { %459 = vmatprep.mubr.msk.bf16.mxu0 %vm621_vm0, %v620_v1  ;;  %113 = vmatprep.subr.bf16.mxu1 %v476_v2  ;;  %v71_v6 = vpack.c.bf16 %v70_v5, %v69_v4  ;;  %v479_v7 = vld [vmem:[#allocation5 + $0x8] ss:$12 sps:$4 sm:$0xff]   ;;  %v79_v9 = vshrl.u32 %v78_v8, 7  ;;  %v76_v11 = vld [vmem:[%s742_s2] sm:$0x7]  ;;  %v480_v57 = vld [vmem:[#allocation7] sm:$0xff]  }
  0x3b   :  { %114 = vmatpush1.bf16.msra.mxu1 %v478_v3  ;;  %444 = vmatpush3.bf16.msra.mxu0 %v480_v57  ;;  %v481_v58 = vld [vmem:[#allocation7 + $0x8] sm:$0xff]   ;;  %v482_v59 = vld [vmem:[#allocation7 + $0x10] sm:$0xff]   ;;  %v483_v60 = vld [vmem:[#allocation7 + $0x18] sm:$0xff]   ;;  %s622_s24 = smov [#allocation8]  }
  0x3c   :  { %437 = vmatprep.subr.bf16.mxu1 %v620_v1  ;;  %v80_v10 = vsub.s32 0, %v79_v9  ;;  %v88_v16 = vsub.s32 2, %v79_v9  ;;  %v84_v21 = vsub.s32 1, %v79_v9  ;;  %445 = vmatprep.subr.bf16.mxu0 %v620_v1  ;;  %v484_v61 = vld [vmem:[#allocation7 + $0x20] sm:$0xff]   ;;  %v485_v62 = vld [vmem:[#allocation7 + $0x28] sm:$0xff]   ;;  %v486_v63 = vld [vmem:[#allocation7 + $0x30] sm:$0xff]  }
  0x3d   :  { %v487_v0 = vld [vmem:[#allocation7 + $0x38] sm:$0xff]  }
  0x3e   :  { %409 = vmatmul.mubr.msk.bf16.vlgmr.msra.gmra.mrb[0].mxu1 %vm109_vm1, %v71_v6  ;;  %v81_v12 = vrot.slane %v76_v11, %v80_v10  ;;  %v89_v23 = vrot.slane %v76_v11, %v88_v16  ;;  %v85_v25 = vrot.slane %v76_v11, %v84_v21 }
  0x3f   :  { %438 = vmatpush3.bf16.msra.mxu1 %v479_v7  ;;  %439 = vmatprep.mubr.msk.bf16.mxu1 %vm621_vm0, %v620_v1 }
  0x40   :  { %446 = vmatpush3.bf16.msra.mxu0 %v481_v58 }
  0x41   :  { %447 = vmatprep.subr.bf16.mxu0 %v620_v1 }
  0x44   :  { %448 = vmatpush3.bf16.msra.mxu0 %v482_v59 }
  0x45   :  { %449 = vmatprep.subr.bf16.mxu0 %v620_v1 }
  0x46   :  { %440 = vmatmul.mubr.msk.bf16.vlgmr.msra.gmra.mrb[4].mxu1 %vm109_vm1, %v71_v6 }
  0x48   :  { %450 = vmatpush3.bf16.msra.mxu0 %v483_v60 }
  0x49   :  { %451 = vmatprep.subr.bf16.mxu0 %v620_v1 }
  0x4c   :  { %452 = vmatpush3.bf16.msra.mxu0 %v484_v61 }
  0x4d   :  { %453 = vmatprep.subr.bf16.mxu0 %v620_v1 }
  0x50   :  { %454 = vmatpush3.bf16.msra.mxu0 %v485_v62 }
  0x51   :  { %455 = vmatprep.subr.bf16.mxu0 %v620_v1 }
  0x54   :  { %456 = vmatpush3.bf16.msra.mxu0 %v486_v63 }
  0x55   :  { %457 = vmatprep.subr.bf16.mxu0 %v620_v1 }
  0x58   :  { %458 = vmatpush3.bf16.msra.mxu0 %v487_v0 }
 0x111   :  { %v147_v13 = vpop.f32.mrb[0].mxu1 }
 0x112   :  { %v148_v14 = vadd.f32 %v147_v13, %v81_v12  ;;  %v149_v15 = vpop.f32.mrb[1].mxu1 }
 0x113   :  { %v151_v17 = vpop.f32.mrb[2].mxu1  ;;  %v150_v32 = vadd.f32 %v149_v15, %v85_v25 }
 0x114   :  { %v411_v18 = vmul.f32 -1.442695, %v148_v14  ;;  %v152_v19 = vadd.f32 %v151_v17, %v81_v12  ;;  %v153_v20 = vpop.f32.mrb[3].mxu1 }
 0x115   :  { %v154_v35 = vadd.f32 %v153_v20, %v85_v25 }
 0x116   :  { %488 = vpow2.f32 %v411_v18  ;;  %v412_v22 = vmul.f32 -1.442695, %v152_v19  ;;  %v415_v18 = vld [vmem:[%s743_s3] ss:$0 sm:$0xff]  ;;  %s393_s3 = sshll.u32 %s622_s24, 4  ;;  %s394_s3 = int_to_ptr.vmem [resolvable:$true] %s393_s3 }
 0x117   :  { %p587_p11 = scmp.lt.s32.totalorder %s394_s3, %s394_s3 }
 0x118   :  { %490 = vpow2.f32 %v412_v22 }
 0x119   :  { %v190_v24 = vpop.f32.mrb[4].mxu1 }
 0x11a   :  { %v191_v26 = vadd.f32 %v190_v24, %v89_v23  ;;  %v441_v27 = vpop.f32.mrb[5].mxu1 }
 0x11b   :  { %v193_v28 = vpop.f32.mrb[6].mxu1 }
 0x11c   :  { %v413_v29 = vmul.f32 -1.442695, %v191_v26  ;;  %v194_v30 = vadd.f32 %v193_v28, %v89_v23  ;;  %v442_v31 = vpop.f32.mrb[7].mxu1  ;;  %v416_v23 = vld [vmem:[%s744_s4] ss:$0 sm:$0xff]  ;;  %s582_s4 = scalar_lea.vmem %s394_s3, 256 }
 0x11d   :  { %v417_v28 = vld [vmem:[%s746_s6] ss:$0 sm:$0xff]  ;;  %p583_p10 = scmp.ne.s32.totalorder %s394_s3, %s582_s4  ;;  %p588_p12 = scmp.lt.s32.totalorder %s582_s4, %s582_s4 }
 0x11e   :  { %492 = vpow2.f32 %v413_v29  ;;  %v414_v33 = vmul.f32 -1.442695, %v194_v30 }
 0x11f   :  { %p589_p13 = por %p588_p12, %p587_p11 }
 0x120   :  { %v489_v34 = vpop.eup %488  ;;  %494 = vpow2.f32 %v414_v33 }
 0x121   :  { %v203_v36 = vadd.f32 1.0, %v489_v34  ;;  %496 = vtanh.f32 %v150_v32  ;;  %p590_p0 = pnand %p589_p13, %p583_p10 }
 0x122   :  { %v491_v37 = vpop.eup %490 }
 0x123   :  { %498 = vrcp.f32 %v203_v36  ;;  %v204_v38 = vadd.f32 1.0, %v491_v37 }
 0x124   :  { %500 = vtanh.f32 %v154_v35 }
 0x125   :  { %502 = vrcp.f32 %v204_v38 }
 0x128   :  { %v493_v39 = vpop.eup %492 }
 0x129   :  { %v217_v41 = vadd.f32 1.0, %v493_v39 }
 0x12a   :  { %v495_v40 = vpop.eup %494 }
 0x12b   :  { %v497_v42 = vpop.eup %496  ;;  %v218_v44 = vadd.f32 1.0, %v495_v40  ;;  %504 = vrcp.f32 %v217_v41 }
 0x12d   :  { %v499_v43 = vpop.eup %498 }
 0x12e   :  { %v501_v45 = vpop.eup %500  ;;  %v223_v46 = vmul.f32 %v499_v43, %v497_v42 }
 0x12f   :  { %v503_v47 = vpop.eup %502 }
 0x130   :  { %506 = vtanh.f32 %v223_v46  ;;  %v224_v48 = vmul.f32 %v503_v47, %v501_v45 }
 0x131   :  { %508 = vrcp.f32 %v218_v44 }
 0x132   :  { %510 = vtanh.f32 %v224_v48 }
 0x135   :  { %v505_v49 = vpop.eup %504 }
 0x13a   :  { %v507_v50 = vpop.eup %506 }
 0x13b   :  { %v509_v51 = vpop.eup %508  ;;  %v227_v52 = vmul.f32 %v507_v50, %v505_v49 }
 0x13c   :  { %v511_v53 = vpop.eup %510 }
 0x13d   :  { %229 = vadd.xlane.f32.xlu0 %v227_v52  ;;  %v233_v54 = vmul.f32 %v227_v52, %v227_v52  ;;  %v228_v55 = vmul.f32 %v511_v53, %v509_v51 }
 0x13f   :  { %235 = vadd.xlane.f32.xlu1 %v233_v54  ;;  %v234_v56 = vmul.f32 %v228_v55, %v228_v55 }
 0x141   :  { %231 = vadd.xlane.f32.xlu0 %v228_v55 }
 0x143   :  { %237 = vadd.xlane.f32.xlu1 %v234_v56 }
 0x1ca   :  { %v230_v2 = vpop.xlane.xlu0 %229 }
 0x1cb   :  { %v239_v3 = vmul.f32 0.03125, %v230_v2 }
 0x1cc   :  { %v236_v4 = vpop.xlane.xlu1 %235 }
 0x1cd   :  { %v243_v5 = vmul.f32 %v239_v3, %v239_v3  ;;  %v241_v6 = vmul.f32 0.03125, %v236_v4  ;;  %v247_v16 = vsub.f32 %v227_v52, %v239_v3 }
 0x1ce   :  { %v232_v7 = vpop.xlane.xlu0 %231 }
 0x1cf   :  { %v245_v8 = vsub.f32 %v241_v6, %v243_v5  ;;  %v240_v9 = vmul.f32 0.03125, %v232_v7 }
 0x1d0   :  { %v238_v10 = vpop.xlane.xlu1 %237 }
 0x1d1   :  { %v249_v11 = vadd.f32 1e-05, %v245_v8  ;;  %v244_v12 = vmul.f32 %v240_v9, %v240_v9  ;;  %v242_v13 = vmul.f32 0.03125, %v238_v10  ;;  %v248_v19 = vsub.f32 %v228_v55, %v240_v9 }
 0x1d3   :  { %512 = vrsqrt.f32 %v249_v11  ;;  %v246_v14 = vsub.f32 %v242_v13, %v244_v12 }
 0x1d5   :  { %v250_v15 = vadd.f32 1e-05, %v246_v14 }
 0x1d7   :  { %514 = vrsqrt.f32 %v250_v15 }
 0x1dd   :  { %v513_v17 = vpop.eup %512 }
 0x1de   :  { %v253_v1 = vmul.f32 %v513_v17, %v247_v16 }
 0x1e0   :  { %v262_v22 = vmul.f32 %v415_v18, %v253_v1 }
 0x1e1   :  { %v515_v20 = vpop.eup %514 }
 0x1e2   :  { %v254_v21 = vmul.f32 %v515_v20, %v248_v19  ;;  %v271_v25 = vadd.f32 %v416_v23, %v262_v22 }
 0x1e4   :  { %v263_v24 = vmul.f32 %v415_v18, %v254_v21 }
 0x1e6   :  { %v272_v26 = vadd.f32 %v416_v23, %v263_v24 }
 0x1e8   :  { %v273_v27 = vpack.c.bf16 %v272_v26, %v271_v25 }
 0x1ea   :  { %460 = vmatmul.mubr.bf16.vlgmr.msra.gmra.mrb[0].mxu0 %v273_v27 }
 0x2bd   :  { %v379_v29 = vpop.f32.mrb[0].mxu0 }
 0x2be   :  { %v380_v30 = vadd.f32 %v417_v28, %v379_v29  ;;  %v461_v31 = vpop.f32.mrb[1].mxu0 }
 0x2bf   :  { %v382_v32 = vpop.f32.mrb[2].mxu0 }
 0x2c0   :  { %386 = vst [vmem:[#allocation8] sm:$0xff] %v380_v30  ;;  %v383_v33 = vadd.f32 %v417_v28, %v382_v32  ;;  %v462_v34 = vpop.f32.mrb[3].mxu0 }
 0x2c2   :  { %387 = vst [vmem:[#allocation8 + $0x8] sm:$0xff] %v383_v33 }
 0x2c3   :  { %593 = shalt.err (!%p590_p0)
}
 0x2c4   :  { %s594_s27 = scalar_lea.hbm %s747_s7, 256 }
 0x2c5   :  { %p595_p1 = scmp.ne.s32.totalorder %s747_s7, %s594_s27  ;;  %p598_p2 = scmp.lt.u32.totalorder %s594_s27, %s747_s7 }
 0x2c7   :  { %p600_p3 = pnand %p598_p2, %p595_p1 }
 0x2c9   :  { %603 = shalt.err (!%p600_p3)
}
 0x2ca   :  { %399 = dma.vmem_to_hbm [thread:$0]  %s394_s3, 256, %s747_s7, [#allocation4], %s614_s1, %s614_s1, %s615_s25  }
 0x2cb   :  { %608 = dma.done.wait [#allocation4], 256  }
 0x2cc   :  { %609 = vsyncadd [#allocation4], 4294967040 }
 0x2cd   :  { %403 = vsyncpa [#allocation3], 1 }
 0x2ce   :  { %404 = vsyncpa [#allocation6], 1 }
 0x2cf   :  { %405 = vsyncpa [#allocation4], 1 }

</bundles_post_ra>
